<compile_context>
chip_gen: v7x
topology: tpu7x:2x2x1
jax: 0.10.0
libtpu: 0.0.40
codegen_flags: <defaults>
</compile_context>

<pallas_src>
import functools

import numpy as np

import jax
import jax.numpy as jnp
from jax.experimental import pallas as pl
from jax.experimental.pallas import tpu as pltpu


def _ssconv_kernel(x_ref, wp_ref, bp_ref, kd_ref, bd_ref, mask_ref, o_ref, pbuf,
                   *, bt, c_in, c_out, hwp, w, padl, padr, hw_padded,
                   negative_slope):
    # x_ref:    (bt, c_in, hwp)    batch tile, spatial flattened & lane-aligned
    # wp_ref:   (c_out, c_in)      BN-folded pointwise weight
    # bp_ref:   (c_out, 1)         BN-folded pointwise bias
    # kd_ref:   (c_out, 9)         depthwise 3x3 taps, t = (dh+1)*3 + (dw+1)
    # bd_ref:   (c_out, 1)         depthwise bias
    # mask_ref: (4, hwp)           rows 0..2: column validity for dw=-1,0,+1
    #                              row 3: "real (unpadded) spatial position"
    # o_ref:    (bt, c_out, hwp)
    # pbuf:     (c_out, padl + hwp + padr) VMEM zero-halo staging buffer

    # Zero only the lane-aligned halo regions.  The interior [padl, padl+hwp) is
    # fully overwritten for every batch element, so zeroing it would be wasted
    # stores.  Scratch is per-core and uninitialised, so this runs on every grid
    # step (no program_id gating -> safe under megacore "parallel" partitioning).
    pbuf[:, 0:padl] = jnp.zeros((c_out, padl), jnp.float32)
    pbuf[:, padl + hwp:padl + hwp + padr] = jnp.zeros((c_out, padr), jnp.float32)

    wp = wp_ref[...]
    bp = bp_ref[...]
    kd = kd_ref[...]
    bd = bd_ref[...]
    masks = mask_ref[...]

    def leaky(v):
        return jnp.where(v >= 0, v, negative_slope * v)

    for b in range(bt):                     # static unroll; bt is kept small
        xb = x_ref[b]                       # (c_in, hwp)

        # --- BN-folded 1x1 pointwise conv + LeakyReLU (lane-dense (c_out, hwp)) ---
        if c_in <= 16:
            # Tiny channel contraction: exact f32 FMAs on the VPU.
            y = bp
            for c in range(c_in):
                y = y + wp[:, c:c + 1] * xb[c:c + 1, :]
        else:
            y = jnp.dot(wp, xb, preferred_element_type=jnp.float32) + bp
        y = leaky(y)
        if hw_padded:
            y = y * masks[3:4, :]           # zero the fake spatial tail positions

        # Stage into the zero-halo scratch; the interior store is lane-aligned.
        pbuf[:, padl:padl + hwp] = y

        # --- 3x3 depthwise conv: centre tap from registers, 8 shifted halo reads ---
        acc = kd[:, 4:5] * y                          # (dh, dw) = (0, 0)
        for dh in (-1, 1):                            # dw == 0 column, off-centre rows
            t = (dh + 1) * 3 + 1
            s = dh * w
            acc = acc + kd[:, t:t + 1] * pbuf[:, padl + s:padl + s + hwp]
        for dw in (-1, 1):                            # dw != 0: one mask per group
            part = None
            for dh in (-1, 0, 1):
                t = (dh + 1) * 3 + (dw + 1)
                s = dh * w + dw
                tap = kd[:, t:t + 1] * pbuf[:, padl + s:padl + s + hwp]
                part = tap if part is None else part + tap
            acc = acc + part * masks[dw + 1:dw + 2, :]

        o_ref[b] = leaky(acc + bd)          # full-lane, aligned store


def _choose_block_batch(batch, c_in, c_out, hwp, budget_bytes=8 << 20):
    """Largest batch tile that divides B, keeps double-buffered in+out blocks
    (with sublane padding) inside a conservative VMEM budget, and leaves >= 2 grid
    steps of parallel work when B > 1 (so both v7x TensorCores get used)."""
    cin_p = ((c_in + 7) // 8) * 8
    cout_p = ((c_out + 7) // 8) * 8
    bt = 1
    for cand in range(1, batch + 1):
        if batch % cand != 0:
            continue
        if cand * (cin_p + cout_p) * hwp * 4 * 2 > budget_bytes:
            continue
        if batch > 1 and (batch // cand) < 2:
            continue
        bt = cand
    return bt


def ssconv(x, point_w, bn_gamma, bn_beta, bn_mean, bn_var, depth_w, depth_b,
           *, eps=1e-5, negative_slope=0.01):
    """x: (B, C_in, H, W) f32 -> (B, C_out, H, W) f32 (SSConv forward, inference BN)."""
    B, C_in, H, W = x.shape
    C_out = point_w.shape[0]
    HW = H * W
    HWP = ((HW + 127) // 128) * 128            # lane-align the spatial axis
    PADL = ((W + 1 + 127) // 128) * 128        # lane-aligned left halo (>= W+1)
    PADR = ((W + 1 + 127) // 128) * 128        # lane-aligned right halo (>= W+1)

    # Fold inference BatchNorm into the bias-free 1x1 pointwise conv.
    scale = bn_gamma / jnp.sqrt(bn_var + eps)                       # (C_in,)
    shift = bn_beta - bn_mean * scale                               # (C_in,)
    pw = point_w.reshape(C_out, C_in).astype(jnp.float32)
    w_eff = pw * scale[None, :]                                     # (C_out, C_in)
    b_eff = (pw @ shift).reshape(C_out, 1).astype(jnp.float32)      # (C_out, 1)

    kd = depth_w.reshape(C_out, 9).astype(jnp.float32)              # (C_out, 9)
    bd = depth_b.reshape(C_out, 1).astype(jnp.float32)              # (C_out, 1)

    x_flat = x.reshape(B, C_in, HW).astype(jnp.float32)
    if HWP != HW:
        x_flat = jnp.pad(x_flat, ((0, 0), (0, 0), (0, HWP - HW)))

    # Host-side constant masks (avoids in-kernel iota/mod entirely).
    col = np.arange(HWP) % W
    masks = np.ones((4, HWP), np.float32)
    masks[0] = (col >= 1).astype(np.float32)          # dw = -1 valid
    masks[2] = (col <= W - 2).astype(np.float32)      # dw = +1 valid
    masks[3] = (np.arange(HWP) < HW).astype(np.float32)
    masks = jnp.asarray(masks)

    Bt = _choose_block_batch(B, C_in, C_out, HWP)
    grid = (B // Bt,)

    kernel = functools.partial(
        _ssconv_kernel, bt=Bt, c_in=C_in, c_out=C_out, hwp=HWP, w=W,
        padl=PADL, padr=PADR, hw_padded=(HWP != HW),
        negative_slope=negative_slope)

    out_flat = pl.pallas_call(
        kernel,
        out_shape=jax.ShapeDtypeStruct((B, C_out, HWP), jnp.float32),
        grid_spec=pltpu.PrefetchScalarGridSpec(
            num_scalar_prefetch=0,
            grid=grid,
            in_specs=[
                pl.BlockSpec((Bt, C_in, HWP), lambda i: (i, 0, 0)),
                pl.BlockSpec((C_out, C_in), lambda i: (0, 0)),
                pl.BlockSpec((C_out, 1), lambda i: (0, 0)),
                pl.BlockSpec((C_out, 9), lambda i: (0, 0)),
                pl.BlockSpec((C_out, 1), lambda i: (0, 0)),
                pl.BlockSpec((4, HWP), lambda i: (0, 0)),
            ],
            out_specs=pl.BlockSpec((Bt, C_out, HWP), lambda i: (i, 0, 0)),
            scratch_shapes=[pltpu.VMEM((C_out, PADL + HWP + PADR), jnp.float32)],
        ),
        compiler_params=pltpu.CompilerParams(
            dimension_semantics=("parallel",),
            vmem_limit_bytes=32 * 1024 * 1024,
        ),
    )(x_flat, w_eff, b_eff, kd, bd, masks)

    if HWP != HW:
        out_flat = out_flat[:, :, :HW]
    return out_flat.reshape(B, C_out, H, W)


def reference(x, point_w, bn_gamma, bn_beta, bn_mean, bn_var, depth_w, depth_b,
              *, eps=1e-5, negative_slope=0.01):
    """Pure-JAX reference matching the PyTorch SSConv forward (inference-mode BN)."""
    C_out = point_w.shape[0]
    scale = (bn_gamma / jnp.sqrt(bn_var + eps))[None, :, None, None]
    xn = (x - bn_mean[None, :, None, None]) * scale + bn_beta[None, :, None, None]
    dn = ("NCHW", "OIHW", "NCHW")
    y = jax.lax.conv_general_dilated(
        xn, point_w, window_strides=(1, 1), padding="VALID",
        dimension_numbers=dn, precision=jax.lax.Precision.HIGHEST)
    y = jnp.where(y >= 0, y, negative_slope * y)
    z = jax.lax.conv_general_dilated(
        y, depth_w, window_strides=(1, 1), padding=((1, 1), (1, 1)),
        dimension_numbers=dn, feature_group_count=C_out,
        precision=jax.lax.Precision.HIGHEST)
    z = z + depth_b[None, :, None, None]
    z = jnp.where(z >= 0, z, negative_slope * z)
    return z


if __name__ == "__main__":
    key = jax.random.PRNGKey(0)
    B, C_IN, C_OUT, H, W = 2, 4, 8, 16, 16

    ks = jax.random.split(key, 8)
    x = jax.random.normal(ks[0], (B, C_IN, H, W), dtype=jnp.float32)

    # PyTorch-style (fan-in scaled uniform) conv parameter init.
    lim_p = 1.0 / (C_IN ** 0.5)
    point_w = jax.random.uniform(ks[1], (C_OUT, C_IN, 1, 1), jnp.float32, -lim_p, lim_p)
    lim_d = 1.0 / (9.0 ** 0.5)
    depth_w = jax.random.uniform(ks[2], (C_OUT, 1, 3, 3), jnp.float32, -lim_d, lim_d)
    depth_b = jax.random.uniform(ks[3], (C_OUT,), jnp.float32, -lim_d, lim_d)

    # Non-trivial BatchNorm2d(C_IN) inference parameters.
    bn_gamma = jax.random.uniform(ks[4], (C_IN,), jnp.float32, 0.5, 1.5)
    bn_beta = 0.1 * jax.random.normal(ks[5], (C_IN,), jnp.float32)
    bn_mean = 0.1 * jax.random.normal(ks[6], (C_IN,), jnp.float32)
    bn_var = jax.random.uniform(ks[7], (C_IN,), jnp.float32, 0.5, 1.5)

    out = ssconv(x, point_w, bn_gamma, bn_beta, bn_mean, bn_var, depth_w, depth_b)
    jax.block_until_ready(out)

    ref = reference(x, point_w, bn_gamma, bn_beta, bn_mean, bn_var, depth_w, depth_b)
    assert out.shape == (B, C_OUT, H, W)
    max_err = float(jnp.max(jnp.abs(out - ref)))
    assert jnp.allclose(out, ref, atol=1e-4, rtol=1e-4), f"mismatch vs reference: {max_err}"

    print("KERNEL_OK")
</pallas_src>

<mosaic_0001>
module attributes {stable_mosaic.version = 11 : i64} {
  func.func @_ssconv_kernel(%arg0: i32, %arg1: memref<1x4x256xf32, #tpu.memory_space<vmem>>, %arg2: memref<8x4xf32, #tpu.memory_space<vmem>>, %arg3: memref<8x1xf32, #tpu.memory_space<vmem>>, %arg4: memref<8x9xf32, #tpu.memory_space<vmem>>, %arg5: memref<8x1xf32, #tpu.memory_space<vmem>>, %arg6: memref<4x256xf32, #tpu.memory_space<vmem>>, %arg7: memref<1x8x256xf32, #tpu.memory_space<vmem>>, %arg8: memref<8x512xf32, #tpu.memory_space<vmem>>) attributes {dimension_semantics = [#tpu.dimension_semantics<parallel>], iteration_bounds = array<i64: 2>, scalar_prefetch = 0 : i64, scratch_operands = 1 : i64, tpu.core_type = #tpu.core_type<tc>, window_params = [{transform_indices = @transform_0, window_bounds = array<i64: 1, 4, 256>}, {pipeline_mode = #tpu.pipeline_mode<synchronous>, transform_indices = @transform_1, window_bounds = array<i64: 8, 4>}, {pipeline_mode = #tpu.pipeline_mode<synchronous>, transform_indices = @transform_2, window_bounds = array<i64: 8, 1>}, {pipeline_mode = #tpu.pipeline_mode<synchronous>, transform_indices = @transform_3, window_bounds = array<i64: 8, 9>}, {pipeline_mode = #tpu.pipeline_mode<synchronous>, transform_indices = @transform_4, window_bounds = array<i64: 8, 1>}, {pipeline_mode = #tpu.pipeline_mode<synchronous>, transform_indices = @transform_5, window_bounds = array<i64: 4, 256>}, {transform_indices = @transform_6, window_bounds = array<i64: 1, 8, 256>}]} {
    %cst = arith.constant 0.000000e+00 : f32
    %0 = vector.broadcast %cst : f32 to vector<8x128xf32>
    %c0 = arith.constant 0 : index
    %c0_0 = arith.constant 0 : index
    %1 = vector.load %arg8[%c0, %c0_0] : memref<8x512xf32, #tpu.memory_space<vmem>>, vector<8x128xf32>
    tpu.vector_store %arg8[%c0, %c0_0], %0 {strides = array<i32>} : memref<8x512xf32, #tpu.memory_space<vmem>>, vector<8x128xf32>,
    %cst_1 = arith.constant 0.000000e+00 : f32
    %2 = vector.broadcast %cst_1 : f32 to vector<8x128xf32>
    %c0_2 = arith.constant 0 : index
    %c384 = arith.constant 384 : index
    %3 = vector.load %arg8[%c0_2, %c384] : memref<8x512xf32, #tpu.memory_space<vmem>>, vector<8x128xf32>
    tpu.vector_store %arg8[%c0_2, %c384], %2 {strides = array<i32>} : memref<8x512xf32, #tpu.memory_space<vmem>>, vector<8x128xf32>,
    %c0_3 = arith.constant 0 : index
    %c0_4 = arith.constant 0 : index
    %4 = vector.load %arg2[%c0_3, %c0_4] : memref<8x4xf32, #tpu.memory_space<vmem>>, vector<8x4xf32>
    %c0_5 = arith.constant 0 : index
    %c0_6 = arith.constant 0 : index
    %5 = vector.load %arg3[%c0_5, %c0_6] : memref<8x1xf32, #tpu.memory_space<vmem>>, vector<8x1xf32>
    %c0_7 = arith.constant 0 : index
    %c0_8 = arith.constant 0 : index
    %6 = vector.load %arg4[%c0_7, %c0_8] : memref<8x9xf32, #tpu.memory_space<vmem>>, vector<8x9xf32>
    %c0_9 = arith.constant 0 : index
    %c0_10 = arith.constant 0 : index
    %7 = vector.load %arg5[%c0_9, %c0_10] : memref<8x1xf32, #tpu.memory_space<vmem>>, vector<8x1xf32>
    %c0_11 = arith.constant 0 : index
    %c0_12 = arith.constant 0 : index
    %8 = vector.load %arg6[%c0_11, %c0_12] : memref<4x256xf32, #tpu.memory_space<vmem>>, vector<4x256xf32>
    %c0_13 = arith.constant 0 : index
    %c0_14 = arith.constant 0 : index
    %c0_15 = arith.constant 0 : index
    %9 = vector.load %arg1[%c0_13, %c0_14, %c0_15] : memref<1x4x256xf32, #tpu.memory_space<vmem>>, vector<1x4x256xf32>
    %10 = vector.shape_cast %9 : vector<1x4x256xf32> to vector<4x256xf32>
    %11 = vector.extract_strided_slice %4 {offsets = [0, 0], sizes = [8, 1], strides = [1, 1]} : vector<8x4xf32> to vector<8x1xf32>
    %12 = vector.extract_strided_slice %10 {offsets = [0, 0], sizes = [1, 256], strides = [1, 1]} : vector<4x256xf32> to vector<1x256xf32>
    %13 = vector.broadcast %11 : vector<8x1xf32> to vector<8x256xf32>
    %14 = vector.broadcast %12 : vector<1x256xf32> to vector<8x256xf32>
    %15 = arith.mulf %13, %14 : vector<8x256xf32>
    %16 = vector.broadcast %5 : vector<8x1xf32> to vector<8x256xf32>
    %17 = arith.addf %16, %15 : vector<8x256xf32>
    %18 = vector.extract_strided_slice %4 {offsets = [0, 1], sizes = [8, 1], strides = [1, 1]} : vector<8x4xf32> to vector<8x1xf32>
    %19 = vector.extract_strided_slice %10 {offsets = [1, 0], sizes = [1, 256], strides = [1, 1]} : vector<4x256xf32> to vector<1x256xf32>
    %20 = vector.broadcast %18 : vector<8x1xf32> to vector<8x256xf32>
    %21 = vector.broadcast %19 : vector<1x256xf32> to vector<8x256xf32>
    %22 = arith.mulf %20, %21 : vector<8x256xf32>
    %23 = arith.addf %17, %22 : vector<8x256xf32>
    %24 = vector.extract_strided_slice %4 {offsets = [0, 2], sizes = [8, 1], strides = [1, 1]} : vector<8x4xf32> to vector<8x1xf32>
    %25 = vector.extract_strided_slice %10 {offsets = [2, 0], sizes = [1, 256], strides = [1, 1]} : vector<4x256xf32> to vector<1x256xf32>
    %26 = vector.broadcast %24 : vector<8x1xf32> to vector<8x256xf32>
    %27 = vector.broadcast %25 : vector<1x256xf32> to vector<8x256xf32>
    %28 = arith.mulf %26, %27 : vector<8x256xf32>
    %29 = arith.addf %23, %28 : vector<8x256xf32>
    %30 = vector.extract_strided_slice %4 {offsets = [0, 3], sizes = [8, 1], strides = [1, 1]} : vector<8x4xf32> to vector<8x1xf32>
    %31 = vector.extract_strided_slice %10 {offsets = [3, 0], sizes = [1, 256], strides = [1, 1]} : vector<4x256xf32> to vector<1x256xf32>
    %32 = vector.broadcast %30 : vector<8x1xf32> to vector<8x256xf32>
    %33 = vector.broadcast %31 : vector<1x256xf32> to vector<8x256xf32>
    %34 = arith.mulf %32, %33 : vector<8x256xf32>
    %35 = arith.addf %29, %34 : vector<8x256xf32>
    %cst_16 = arith.constant 0.000000e+00 : f32
    %36 = vector.broadcast %cst_16 : f32 to vector<8x256xf32>
    %37 = arith.cmpf oge, %35, %36 : vector<8x256xf32>
    %cst_17 = arith.constant 0.00999999977 : f32
    %38 = vector.broadcast %cst_17 : f32 to vector<8x256xf32>
    %39 = arith.mulf %38, %35 : vector<8x256xf32>
    %40 = arith.select %37, %35, %39 : vector<8x256xi1>, vector<8x256xf32>
    %c0_18 = arith.constant 0 : index
    %c128 = arith.constant 128 : index
    %41 = vector.load %arg8[%c0_18, %c128] : memref<8x512xf32, #tpu.memory_space<vmem>>, vector<8x256xf32>
    tpu.vector_store %arg8[%c0_18, %c128], %40 {strides = array<i32>} : memref<8x512xf32, #tpu.memory_space<vmem>>, vector<8x256xf32>,
    %42 = vector.extract_strided_slice %6 {offsets = [0, 4], sizes = [8, 1], strides = [1, 1]} : vector<8x9xf32> to vector<8x1xf32>
    %43 = vector.broadcast %42 : vector<8x1xf32> to vector<8x256xf32>
    %44 = arith.mulf %43, %40 : vector<8x256xf32>
    %45 = vector.extract_strided_slice %6 {offsets = [0, 1], sizes = [8, 1], strides = [1, 1]} : vector<8x9xf32> to vector<8x1xf32>
    %c0_19 = arith.constant 0 : index
    %c112 = arith.constant 112 : index
    %46 = vector.load %arg8[%c0_19, %c112] : memref<8x512xf32, #tpu.memory_space<vmem>>, vector<8x256xf32>
    %47 = vector.broadcast %45 : vector<8x1xf32> to vector<8x256xf32>
    %48 = arith.mulf %47, %46 : vector<8x256xf32>
    %49 = arith.addf %44, %48 : vector<8x256xf32>
    %50 = vector.extract_strided_slice %6 {offsets = [0, 7], sizes = [8, 1], strides = [1, 1]} : vector<8x9xf32> to vector<8x1xf32>
    %c0_20 = arith.constant 0 : index
    %c144 = arith.constant 144 : index
    %51 = vector.load %arg8[%c0_20, %c144] : memref<8x512xf32, #tpu.memory_space<vmem>>, vector<8x256xf32>
    %52 = vector.broadcast %50 : vector<8x1xf32> to vector<8x256xf32>
    %53 = arith.mulf %52, %51 : vector<8x256xf32>
    %54 = arith.addf %49, %53 : vector<8x256xf32>
    %55 = vector.extract_strided_slice %6 {offsets = [0, 0], sizes = [8, 1], strides = [1, 1]} : vector<8x9xf32> to vector<8x1xf32>
    %c0_21 = arith.constant 0 : index
    %c111 = arith.constant 111 : index
    %56 = vector.load %arg8[%c0_21, %c111] : memref<8x512xf32, #tpu.memory_space<vmem>>, vector<8x256xf32>
    %57 = vector.broadcast %55 : vector<8x1xf32> to vector<8x256xf32>
    %58 = arith.mulf %57, %56 : vector<8x256xf32>
    %59 = vector.extract_strided_slice %6 {offsets = [0, 3], sizes = [8, 1], strides = [1, 1]} : vector<8x9xf32> to vector<8x1xf32>
    %c0_22 = arith.constant 0 : index
    %c127 = arith.constant 127 : index
    %60 = vector.load %arg8[%c0_22, %c127] : memref<8x512xf32, #tpu.memory_space<vmem>>, vector<8x256xf32>
    %61 = vector.broadcast %59 : vector<8x1xf32> to vector<8x256xf32>
    %62 = arith.mulf %61, %60 : vector<8x256xf32>
    %63 = arith.addf %58, %62 : vector<8x256xf32>
    %64 = vector.extract_strided_slice %6 {offsets = [0, 6], sizes = [8, 1], strides = [1, 1]} : vector<8x9xf32> to vector<8x1xf32>
    %c0_23 = arith.constant 0 : index
    %c143 = arith.constant 143 : index
    %65 = vector.load %arg8[%c0_23, %c143] : memref<8x512xf32, #tpu.memory_space<vmem>>, vector<8x256xf32>
    %66 = vector.broadcast %64 : vector<8x1xf32> to vector<8x256xf32>
    %67 = arith.mulf %66, %65 : vector<8x256xf32>
    %68 = arith.addf %63, %67 : vector<8x256xf32>
    %69 = vector.extract_strided_slice %8 {offsets = [0, 0], sizes = [1, 256], strides = [1, 1]} : vector<4x256xf32> to vector<1x256xf32>
    %70 = vector.broadcast %69 : vector<1x256xf32> to vector<8x256xf32>
    %71 = arith.mulf %68, %70 : vector<8x256xf32>
    %72 = arith.addf %54, %71 : vector<8x256xf32>
    %73 = vector.extract_strided_slice %6 {offsets = [0, 2], sizes = [8, 1], strides = [1, 1]} : vector<8x9xf32> to vector<8x1xf32>
    %c0_24 = arith.constant 0 : index
    %c113 = arith.constant 113 : index
    %74 = vector.load %arg8[%c0_24, %c113] : memref<8x512xf32, #tpu.memory_space<vmem>>, vector<8x256xf32>
    %75 = vector.broadcast %73 : vector<8x1xf32> to vector<8x256xf32>
    %76 = arith.mulf %75, %74 : vector<8x256xf32>
    %77 = vector.extract_strided_slice %6 {offsets = [0, 5], sizes = [8, 1], strides = [1, 1]} : vector<8x9xf32> to vector<8x1xf32>
    %c0_25 = arith.constant 0 : index
    %c129 = arith.constant 129 : index
    %78 = vector.load %arg8[%c0_25, %c129] : memref<8x512xf32, #tpu.memory_space<vmem>>, vector<8x256xf32>
    %79 = vector.broadcast %77 : vector<8x1xf32> to vector<8x256xf32>
    %80 = arith.mulf %79, %78 : vector<8x256xf32>
    %81 = arith.addf %76, %80 : vector<8x256xf32>
    %82 = vector.extract_strided_slice %6 {offsets = [0, 8], sizes = [8, 1], strides = [1, 1]} : vector<8x9xf32> to vector<8x1xf32>
    %c0_26 = arith.constant 0 : index
    %c145 = arith.constant 145 : index
    %83 = vector.load %arg8[%c0_26, %c145] : memref<8x512xf32, #tpu.memory_space<vmem>>, vector<8x256xf32>
    %84 = vector.broadcast %82 : vector<8x1xf32> to vector<8x256xf32>
    %85 = arith.mulf %84, %83 : vector<8x256xf32>
    %86 = arith.addf %81, %85 : vector<8x256xf32>
    %87 = vector.extract_strided_slice %8 {offsets = [2, 0], sizes = [1, 256], strides = [1, 1]} : vector<4x256xf32> to vector<1x256xf32>
    %88 = vector.broadcast %87 : vector<1x256xf32> to vector<8x256xf32>
    %89 = arith.mulf %86, %88 : vector<8x256xf32>
    %90 = arith.addf %72, %89 : vector<8x256xf32>
    %91 = vector.broadcast %7 : vector<8x1xf32> to vector<8x256xf32>
    %92 = arith.addf %90, %91 : vector<8x256xf32>
    %cst_27 = arith.constant 0.000000e+00 : f32
    %93 = vector.broadcast %cst_27 : f32 to vector<8x256xf32>
    %94 = arith.cmpf oge, %92, %93 : vector<8x256xf32>
    %cst_28 = arith.constant 0.00999999977 : f32
    %95 = vector.broadcast %cst_28 : f32 to vector<8x256xf32>
    %96 = arith.mulf %95, %92 : vector<8x256xf32>
    %97 = arith.select %94, %92, %96 : vector<8x256xi1>, vector<8x256xf32>
    %c0_29 = arith.constant 0 : index
    %c0_30 = arith.constant 0 : index
    %c0_31 = arith.constant 0 : index
    %98 = vector.load %arg7[%c0_29, %c0_30, %c0_31] : memref<1x8x256xf32, #tpu.memory_space<vmem>>, vector<1x8x256xf32>
    %99 = vector.shape_cast %98 : vector<1x8x256xf32> to vector<8x256xf32>
    %100 = vector.shape_cast %97 : vector<8x256xf32> to vector<1x8x256xf32>
    tpu.vector_store %arg7[%c0_29, %c0_30, %c0_31], %100 {strides = array<i32>} : memref<1x8x256xf32, #tpu.memory_space<vmem>>, vector<1x8x256xf32>,
    return
  }
  func.func @transform_0(%arg0: i32) -> (i32, i32, i32) {
    %c0_i32 = arith.constant 0 : i32
    %c0_i32_0 = arith.constant 0 : i32
    %c0_i32_1 = arith.constant 0 : i32
    return %arg0, %c0_i32, %c0_i32_0 : i32, i32, i32
  }
  func.func @transform_1(%arg0: i32) -> (i32, i32) {
    %c0_i32 = arith.constant 0 : i32
    %c0_i32_0 = arith.constant 0 : i32
    %c0_i32_1 = arith.constant 0 : i32
    return %c0_i32, %c0_i32_0 : i32, i32
  }
  func.func @transform_2(%arg0: i32) -> (i32, i32) {
    %c0_i32 = arith.constant 0 : i32
    %c0_i32_0 = arith.constant 0 : i32
    %c0_i32_1 = arith.constant 0 : i32
    return %c0_i32, %c0_i32_0 : i32, i32
  }
  func.func @transform_3(%arg0: i32) -> (i32, i32) {
    %c0_i32 = arith.constant 0 : i32
    %c0_i32_0 = arith.constant 0 : i32
    %c0_i32_1 = arith.constant 0 : i32
    return %c0_i32, %c0_i32_0 : i32, i32
  }
  func.func @transform_4(%arg0: i32) -> (i32, i32) {
    %c0_i32 = arith.constant 0 : i32
    %c0_i32_0 = arith.constant 0 : i32
    %c0_i32_1 = arith.constant 0 : i32
    return %c0_i32, %c0_i32_0 : i32, i32
  }
  func.func @transform_5(%arg0: i32) -> (i32, i32) {
    %c0_i32 = arith.constant 0 : i32
    %c0_i32_0 = arith.constant 0 : i32
    %c0_i32_1 = arith.constant 0 : i32
    return %c0_i32, %c0_i32_0 : i32, i32
  }
  func.func @transform_6(%arg0: i32) -> (i32, i32, i32) {
    %c0_i32 = arith.constant 0 : i32
    %c0_i32_0 = arith.constant 0 : i32
    %c0_i32_1 = arith.constant 0 : i32
    return %arg0, %c0_i32, %c0_i32_0 : i32, i32, i32
  }
}

</mosaic_0001>

<bundles_post_ra>
// kernel: tpu_custom_call.1
= control target key start
LH: loop header
LB: loop body
LE: loop exit
PB: predicated region body
PF: predicated region fallthrough
CT: control target
= control target key end

     0   :  { %11 = vsyncpa [#allocation4], 0  ;;  %s1156_s0 = inlined_call_operand.vmem [shape: f32[2,4,256], index: 0, kind: input, shape index: {}]   ;;  %s1157_s1 = inlined_call_operand.vmem [shape: f32[8,4], index: 1, kind: input, shape index: {}]   ;;  %s1158_s2 = inlined_call_operand.vmem [shape: f32[8,1], index: 2, kind: input, shape index: {}]   ;;  %s1159_s3 = inlined_call_operand.vmem [shape: f32[8,9], index: 3, kind: input, shape index: {}]   ;;  %s1160_s4 = inlined_call_operand.vmem [shape: f32[8,1], index: 4, kind: input, shape index: {}]   ;;  %s1161_s5 = inlined_call_operand.vmem [shape: f32[4,256], index: 5, kind: input, shape index: {}]   ;;  %s1162_s6 = inlined_call_operand.hbm [shape: f32[2,8,256], index: 6, kind: output, shape index: {}]  }
   0x1   :  { %13 = vsyncpa [#allocation4 + $0x1], 0  ;;  %s932_s21 = smov 0   ;;  %s934_s22 = smov 0  }
   0x2   :  { %s936_s23 = smov 0   ;;  %s938_s24 = smov 0  }
   0x3 LB: > { %s953_s25 = sadd.s32 4294967295, %s878_s24   ;;  %s733_s26 = sadd.s32 4294967294, %s878_s24   ;;  %s878_s24 = sphi %s938_s24, %s1168_s24   ;;  %s874_s23 = sphi %s936_s23, %s1167_s23   ;;  %s870_s22 = sphi %s934_s22, %s1166_s22   ;;  %s866_s21 = sphi %s932_s21, %s1165_s21  }
   0x4   : > { %s957_s27 = sadd.s32 1, %s878_s24   ;;  %s157_s28 = sadd.s32 1, %s874_s23 }
   0x5   : > { %s154_s29 = ssub.s32 %s878_s24, %s957_s27  ;;  %p167_p0 = scmp.ne.s32.totalorder %s874_s23, %s870_s22 }
   0x6   : > { %p155_p1 = scmp.eq.s32.totalorder %s154_s29, 0  ;;  %p168_p2 = scmp.eq.s32.totalorder %s953_s25, 1 }
   0x7   : > { %p173_p3 = scmp.ne.s32.totalorder %s870_s22, %s866_s21  ;;  %p174_p4 = scmp.eq.s32.totalorder %s733_s26, 1 }
   0x8   : > { %s968_s30 = scalar_select %p155_p1, %s874_s23, %s157_s28  }
   0x9   : > { %p970_p5 = por %p168_p2, %p167_p0  ;;  %p974_p6 = por %p174_p4, %p173_p3 }
   0xa   : > { %p736_p7 = scmp.ge.s32.totalorder %s878_s24, 1  ;;  %p215_p8 = scmp.lt.s32.totalorder %s878_s24, 3 }
   0xc   : > { %p216_p9 = pnand %p736_p7, %p215_p8 }
   0xd   : > { %v252_v0 = vld [vmem:[%s1157_s1] sm:$0xff] (!%p216_p9)  ;;  %v880_v1 = vmov (!%p216_p9), 1   ;;  %v881_v2 = vmov (!%p216_p9), 0   ;;  %p245_p10 = scmp.lt.s32.totalorder (!%p216_p9), %s953_s25, 1  ;;  %v264_v3 = vlaneseq (!%p216_p9)  ;;  %v882_v6 = vmov (!%p216_p9), 2   ;;  %s887_s28 = smov (!%p216_p9), 111  }
   0xe   : > { %219 = sbr.rel (%p216_p9) target bundleno = 449 (0x1c1), region = 44  ;;  %803 = vset.pattern.permute.xlu1 (!%p216_p9), %v880_v1  ;;  %802 = vset.pattern.permute.xlu0 (!%p216_p9), %v881_v2  ;;  %v253_v4 = vld [vmem:[%s1158_s2] sm:$0xff] (!%p216_p9)  ;;  %v883_v12 = vmov (!%p216_p9), 3   ;;  %v884_v15 = vmov (!%p216_p9), 5   ;;  %v885_v16 = vmov (!%p216_p9), 6   ;;  %v886_v18 = vmov (!%p216_p9), 8  }
   0xf   : > { %292 = vperm.xlu1 (!%p216_p9), %803, %v252_v0   ;;  %260 = vperm.xlu0 (!%p216_p9), %802, %v252_v0   ;;  %v989_v5 = vshrl.u32 (!%p216_p9), %v264_v3, 7  ;;  %v1002_v11 = vld [vmem:[%s1159_s3] sm:$0xff] (!%p216_p9)  ;;  %v888_v23 = vmov (!%p216_p9), 7   ;;  %v889_v27 = vmov (!%p216_p9), 4   ;;  %s890_s29 = smov (!%p216_p9), 112   ;;  %s891_s9 = smov (!%p216_p9), 96  }
  0x10   : > { %v256_v14 = vld [vmem:[%s1161_s5] sm:$0xff] (!%p216_p9)  ;;  %s892_s10 = smov (!%p216_p9), 113   ;;  %vm483_vm2 = vcmask (!%p216_p9), 785408   ;;  %vm429_vm3 = vcmask (!%p216_p9), 916480   ;;  %vm620_vm4 = vcmask (!%p216_p9), 924672   ;;  %s895_s15 = smov (!%p216_p9), 15  }
  0x11   : > { %v270_v7 = vsub.s32 (!%p216_p9), 4, %v989_v5  ;;  %v266_v9 = vsub.s32 (!%p216_p9), 0, %v989_v5  ;;  %v1016_v20 = vsub.s32 (!%p216_p9), 2, %v989_v5  ;;  %v327_v26 = vsub.s32 (!%p216_p9), 6, %v989_v5  ;;  %s242_s16 = sand.u32 (!%p216_p9), 1, %s870_s22   ;;  %s746_s18 = sshll.u32 (!%p216_p9), %s953_s25, 8 }
  0x12   : > { %v297_v30 = vsub.s32 (!%p216_p9), 1, %v989_v5  ;;  %v301_v31 = vsub.s32 (!%p216_p9), 5, %v989_v5  ;;  %v349_v38 = vsub.s32 (!%p216_p9), 3, %v989_v5  ;;  %v353_v39 = vsub.s32 (!%p216_p9), 7, %v989_v5 }
  0x13   : > { %804 = vset.pattern.permute.xlu1 (!%p216_p9), %v882_v6  ;;  %286 = vperm.xlu0 (!%p216_p9), %802, %v253_v4   ;;  %v500_v17 = vrot.slane (!%p216_p9), %v256_v14, %v270_v7  ;;  %v496_v21 = vrot.slane (!%p216_p9), %v256_v14, %v266_v9  ;;  %v599_v22 = vrot.slane (!%p216_p9), %v256_v14, %v1016_v20  ;;  %vm517_vm5 = vcmask (!%p216_p9), 908288  }
  0x14   : > { %318 = vperm.xlu1 (!%p216_p9), %804, %v252_v0   ;;  %v1024_v28 = vrot.slane (!%p216_p9), %v256_v14, %v327_v26  ;;  %vm403_vm6 = vcmask (!%p216_p9), 130048   ;;  %vm534_vm7 = vcmask (!%p216_p9), 138240   ;;  %vm637_vm8 = vcmask (!%p216_p9), 121856  }
  0x15   : > { %s246_s13 = scalar_select %p245_p10, %s953_s25, 1  ;;  %v510_v19 = vrot.slane %v500_v17, %v266_v9  ;;  %v506_v24 = vrot.slane %v496_v21, %v266_v9  ;;  %v1021_v25 = vrot.slane %v599_v22, %v1016_v20 }
  0x16   : > { %v613_v29 = vrot.slane %v1024_v28, %v1016_v20  ;;  %s660_s25 = scalar_lea.sflag [#allocation4], %s242_s16 }
  0x17   : > { %s745_s14 = sshll.u32 %s246_s13, 3  ;;  %805 = vset.pattern.permute.xlu0 %v883_v12  ;;  %s893_s13 = smov 16  }
  0x18   : > { %s249_s17 = scalar_lea.vmem %s1156_s0, %s745_s14  ;;  %806 = vset.pattern.permute.xlu1 %v883_v12  ;;  %344 = vperm.xlu0 %805, %v252_v0   ;;  %s894_s14 = smov 17  }
  0x19   : > { %v995_v8 = vld [vmem:[%s249_s17] sm:$0xff]  ;;  %444 = vperm.xlu1 %806, %v1002_v11   ;;  %s737_s17 = sshll.u32 %s242_s16, 4 }
  0x1a   : > { %v271_v10 = vrot.slane %v995_v8, %v270_v7  ;;  %v267_v32 = vrot.slane %v995_v8, %v266_v9  ;;  %v298_v33 = vrot.slane %v995_v8, %v297_v30  ;;  %v302_v34 = vrot.slane %v995_v8, %v301_v31  ;;  %s244_s19 = scalar_lea.vmem [#allocation3], %s737_s17 }
  0x1b   : > { %v324_v36 = vrot.slane %v995_v8, %v1016_v20  ;;  %v328_v37 = vrot.slane %v995_v8, %v327_v26  ;;  %v350_v48 = vrot.slane %v995_v8, %v349_v38  ;;  %v354_v49 = vrot.slane %v995_v8, %v353_v39  ;;  %s674_s20 = sshll.u32 %s244_s19, 4  ;;  %s1114_s20 = int_to_ptr.vmem [resolvable:$true] %s674_s20 }
  0x1c   : > { %v281_v13 = vrot.slane %v271_v10, %v266_v9  ;;  %808 = vset.pattern.permute.xlu0 %v884_v15  ;;  %v277_v35 = vrot.slane %v267_v32, %v266_v9  ;;  %v308_v42 = vrot.slane %v298_v33, %v297_v30  ;;  %v312_v43 = vrot.slane %v302_v34, %v297_v30 }
  0x1d   : > { %807 = vset.pattern.permute.xlu1 %v885_v16  ;;  %549 = vperm.xlu0 %808, %v1002_v11   ;;  %v334_v46 = vrot.slane %v324_v36, %v1016_v20  ;;  %v338_v47 = vrot.slane %v328_v37, %v1016_v20  ;;  %v360_v58 = vrot.slane %v350_v48, %v349_v38 }
  0x1e   : > { %468 = vperm.xlu1 %807, %v1002_v11   ;;  %v364_v59 = vrot.slane %v354_v49, %v349_v38 }
  0x21   : > { %811 = vset.pattern.permute.xlu0 %v880_v1 }
  0x22   : > { %809 = vset.pattern.permute.xlu1 %v886_v18  ;;  %388 = vperm.xlu0 %811, %v1002_v11  }
  0x23   : > { %573 = vperm.xlu1 %809, %v1002_v11  }
  0x26   : > { %515 = vrot.lane.b32.xlu0 %v510_v19, %s887_s28 }
  0x27   : > { %810 = vset.pattern.permute.xlu1 %v881_v2  ;;  %814 = vset.pattern.permute.xlu0 %v889_v27 }
  0x28   : > { %437 = vperm.xlu1 %810, %v1002_v11  }
  0x2c   : > { %812 = vset.pattern.permute.xlu1 %v882_v6 }
  0x2d   : > { %542 = vperm.xlu1 %812, %v1002_v11  }
  0x31   : > { %813 = vset.pattern.permute.xlu1 %v888_v23 }
  0x32   : > { %414 = vperm.xlu1 %813, %v1002_v11  }
  0x36   : > { %513 = vrot.lane.b32.xlu1 %v506_v24, %s887_s28 }
  0x8e   : > { %v293_v40 = vpop.permute.xlu1 %292  ;;  %v261_v41 = vpop.permute.xlu0 %260 }
  0x8f   : > { %v282_v44 = vmul.f32 %v277_v35, %v261_v41  ;;  %v283_v45 = vmul.f32 %v281_v13, %v261_v41  ;;  %v313_v51 = vmul.f32 %v308_v42, %v293_v40  ;;  %v314_v52 = vmul.f32 %v312_v43, %v293_v40  ;;  %v255_v35 = vld [vmem:[%s1160_s4] sm:$0xff] }
  0x92   : > { %v287_v50 = vpop.permute.xlu0 %286 }
  0x93   : > { %v289_v53 = vadd.f32 %v287_v50, %v282_v44  ;;  %v290_v54 = vadd.f32 %v287_v50, %v283_v45  ;;  %v319_v55 = vpop.permute.xlu1 %318 }
  0x94   : > { %v339_v56 = vmul.f32 %v334_v46, %v319_v55  ;;  %v340_v57 = vmul.f32 %v338_v47, %v319_v55 }
  0x95   : > { %v315_v60 = vadd.f32 %v313_v51, %v289_v53  ;;  %v316_v61 = vadd.f32 %v314_v52, %v290_v54 }
  0x97   : > { %v341_v62 = vadd.f32 %v339_v56, %v315_v60  ;;  %v342_v63 = vadd.f32 %v340_v57, %v316_v61  ;;  %v345_v0 = vpop.permute.xlu0 %344 }
  0x98   : > { %v365_v1 = vmul.f32 %v360_v58, %v345_v0  ;;  %v366_v3 = vmul.f32 %v364_v59, %v345_v0  ;;  %v445_v4 = vpop.permute.xlu1 %444 }
  0x99   : > { %v447_v5 = vmul.f32 0.0, %v445_v4 }
  0x9a   : > { %v367_v6 = vadd.f32 %v365_v1, %v341_v62  ;;  %v368_v7 = vadd.f32 %v366_v3, %v342_v63 }
  0x9b   : > { %453 = vrot.lane.b32.xlu0 %v447_v5, %s890_s29 }
  0x9c   : > { %vm370_vm0 = vcmp.ge.f32.partialorder %v368_v7, 0.0  ;;  %v372_v8 = vmul.f32 0.01, %v368_v7  ;;  %v550_v9 = vpop.permute.xlu0 %549  ;;  %v371_v15 = vmul.f32 0.01, %v367_v6  ;;  %vm369_vm1 = vcmp.ge.f32.partialorder %v367_v6, 0.0 }
  0x9d   : > { %v554_v10 = vmul.f32 0.0, %v550_v9  ;;  %v469_v12 = vpop.permute.xlu1 %468 }
  0x9e   : > { %v1043_v13 = vsel %vm370_vm0, %v368_v7, %v372_v8  ;;  %v473_v14 = vmul.f32 0.0, %v469_v12  ;;  %v1048_v19 = vsel %vm369_vm1, %v367_v6, %v371_v15 }
  0x9f   : > { %562 = vrot.lane.b32.xlu0 %v554_v10, %s890_s29  ;;  %v449_v16 = vmul.f32 %v445_v4, %v1043_v13  ;;  %v472_v21 = vmul.f32 %v469_v12, %v1043_v13  ;;  %v448_v22 = vmul.f32 %v445_v4, %v1048_v19  ;;  %v552_v23 = vmul.f32 %v550_v9, %v1048_v19 }
  0xa0   : > { %481 = vrot.lane.b32.xlu1 %v473_v14, %s891_s9  ;;  %v471_v24 = vmul.f32 %v469_v12, %v1048_v19  ;;  %v553_v27 = vmul.f32 %v550_v9, %v1043_v13 }
  0xa1   : > { %v389_v33 = vpop.permute.xlu0 %388 }
  0xa2   : > { %v574_v17 = vpop.permute.xlu1 %573  ;;  %v391_v34 = vmul.f32 0.0, %v389_v33  ;;  %v393_v37 = vmul.f32 %v389_v33, %v1043_v13  ;;  %v392_v20 = vmul.f32 %v389_v33, %v1048_v19 }
  0xa3   : > { %v578_v18 = vmul.f32 0.0, %v574_v17  ;;  %457 = vrot.lane.b32.xlu0 %v449_v16, %s890_s29  ;;  %v577_v26 = vmul.f32 %v574_v17, %v1043_v13  ;;  %v576_v31 = vmul.f32 %v574_v17, %v1048_v19 }
  0xa5   : > { %586 = vrot.lane.b32.xlu1 %v578_v18, %s891_s9 }
  0xa7   : > { %479 = vrot.lane.b32.xlu0 %v472_v21, %s891_s9  ;;  %v1058_v30 = vpop.permute.xlu1 %437 }
  0xa8   : > { %v442_v42 = vmul.f32 %v1058_v30, %v1043_v13  ;;  %v440_v55 = vmul.f32 0.0, %v1058_v30  ;;  %v441_v4 = vmul.f32 %v1058_v30, %v1048_v19 }
  0xa9   : > { %455 = vrot.lane.b32.xlu1 %v448_v22, %s890_s29 }
  0xab   : > { %558 = vrot.lane.b32.xlu0 %v552_v23, %s890_s29 }
  0xac   : > { %v1063_v32 = vpop.permute.xlu1 %542 }
  0xad   : > { %477 = vrot.lane.b32.xlu1 %v471_v24, %s891_s9  ;;  %v545_v56 = vmul.f32 0.0, %v1063_v32  ;;  %v546_v60 = vmul.f32 %v1063_v32, %v1048_v19  ;;  %v547_v16 = vmul.f32 %v1063_v32, %v1043_v13 }
  0xaf   : > { %584 = vrot.lane.b32.xlu0 %v577_v26, %s891_s9 }
  0xb1   : > { %560 = vrot.lane.b32.xlu1 %v553_v27, %s890_s29  ;;  %v415_v36 = vpop.permute.xlu1 %414 }
  0xb2   : > { %v417_v28 = vmul.f32 %v415_v36, %v1048_v19 }
  0xb3   : > { %616 = vrot.lane.b32.xlu0 %v1021_v25, %s892_s10  ;;  %v419_v25 = vmul.f32 0.0, %v415_v36 }
  0xb5   : > { %582 = vrot.lane.b32.xlu1 %v576_v31, %s891_s9  ;;  %s816_s9 = scalar_lea.vmem %s1114_s20, 256 }
  0xb6   : > { %p817_p11 = scmp.ne.s32.totalorder %s1114_s20, %s816_s9 }
  0xb7   : > { %379 = vperm.xlu0 %814, %v1002_v11   ;;  %v418_v11 = vmul.f32 %v415_v36, %v1043_v13 }
  0xb8   : > { %p818_p12 = pnand %p817_p11, %p970_p5 }
  0xb9   : > { %618 = vrot.lane.b32.xlu1 %v613_v29, %s892_s10  ;;  %v514_v29 = vpop.permute.xlu1 %513  ;;  %s896_s10 = smov [#allocation3]  }
  0xba   : > { %p819_p13 = pneg %p818_p12  ;;  %s820_s11 = sshll.u32 %s896_s10, 4  ;;  %s821_s11 = int_to_ptr.vmem [resolvable:$false] %s820_s11 }
  0xbb   : > { %815 = vset.pattern.permute.xlu0 %v881_v2  ;;  %v516_v2 = vpop.permute.xlu0 %515  ;;  %s822_s12 = scalar_lea.vmem %s821_s11, 512  ;;  %p823_p0 = scmp.lt.s32.totalorder %s1114_s20, %s821_s11 }
  0xbc   : > { %646 = vperm.xlu0 %815, %v255_v35   ;;  %v518_v22 = vsel %vm517_vm5, %v514_v29, %v516_v2  ;;  %p824_p1 = scmp.lt.s32.totalorder %s822_s12, %s816_s9 }
  0xbd   : > { %397 = vrot.lane.b32.xlu1 %v391_v34, %s893_s13 }
  0xbe   : > { %p825_p2 = por %p824_p1, %p823_p0 }
  0xc0   : > { %401 = vrot.lane.b32.xlu0 %v393_v37, %s893_s13  ;;  %p826_p3 = pnand %p825_p2, %p819_p13 }
  0xc1   : > { %427 = vrot.lane.b32.xlu1 %v419_v25, %s890_s29 }
  0xc4   : > { %425 = vrot.lane.b32.xlu0 %v418_v11, %s890_s29 }
  0xc5   : > { %399 = vrot.lane.b32.xlu1 %v392_v20, %s893_s13 }
  0xc9   : > { %423 = vrot.lane.b32.xlu1 %v417_v28, %s890_s29  ;;  %s1112_s29 = scalar_lea.hbm %s1162_s6, %s746_s18 }
 0x10d   : > { %v454_v38 = vpop.permute.xlu0 %453 }
 0x111   : > { %v563_v39 = vpop.permute.xlu0 %562 }
 0x112   : > { %v482_v40 = vpop.permute.xlu1 %481 }
 0x115   : > { %v458_v41 = vpop.permute.xlu0 %457 }
 0x116   : > { %v466_v44 = vadd.f32 %v458_v41, %v442_v42 }
 0x117   : > { %v587_v43 = vpop.permute.xlu1 %586 }
 0x119   : > { %v480_v45 = vpop.permute.xlu0 %479 }
 0x11a   : > { %v485_v46 = vsel %vm483_vm2, %v480_v45, %v482_v40 }
 0x11b   : > { %v491_v47 = vadd.f32 %v485_v46, %v466_v44  ;;  %v456_v48 = vpop.permute.xlu1 %455 }
 0x11c   : > { %v459_v52 = vsel %vm429_vm3, %v454_v38, %v456_v48  ;;  %v460_v1 = vsel %vm429_vm3, %v456_v48, %v458_v41 }
 0x11d   : > { %v559_v49 = vpop.permute.xlu0 %558  ;;  %v524_v50 = vmul.f32 %v516_v2, %v491_v47  ;;  %v464_v57 = vadd.f32 %v459_v52, %v440_v55  ;;  %v465_v10 = vadd.f32 %v460_v1, %v441_v4 }
 0x11e   : > { %v569_v58 = vadd.f32 %v559_v49, %v545_v56 }
 0x11f   : > { %532 = vrot.lane.b32.xlu0 %v524_v50, %s894_s14  ;;  %v478_v51 = vpop.permute.xlu1 %477 }
 0x120   : > { %v489_v5 = vadd.f32 %v478_v51, %v464_v57  ;;  %v484_v7 = vsel %vm483_vm2, %v478_v51, %v480_v45 }
 0x121   : > { %v585_v53 = vpop.permute.xlu0 %584  ;;  %v490_v17 = vadd.f32 %v484_v7, %v465_v10 }
 0x122   : > { %v522_v18 = vmul.f32 %v514_v29, %v489_v5  ;;  %v589_v24 = vsel %vm483_vm2, %v585_v53, %v587_v43 }
 0x123   : > { %v561_v54 = vpop.permute.xlu1 %560  ;;  %v523_v23 = vmul.f32 %v518_v22, %v490_v17 }
 0x124   : > { %v564_v59 = vsel %vm429_vm3, %v559_v49, %v561_v54  ;;  %v565_v14 = vsel %vm429_vm3, %v561_v54, %v563_v39 }
 0x125   : > { %v617_v62 = vpop.permute.xlu0 %616  ;;  %v570_v3 = vadd.f32 %v564_v59, %v546_v60  ;;  %v571_v21 = vadd.f32 %v565_v14, %v547_v16 }
 0x127   : > { %v583_v61 = vpop.permute.xlu1 %582  ;;  %v595_v26 = vadd.f32 %v589_v24, %v571_v21 }
 0x128   : > { %v588_v63 = vsel %vm483_vm2, %v583_v61, %v585_v53  ;;  %v593_v0 = vadd.f32 %v583_v61, %v569_v58 }
 0x129   : > { %v594_v8 = vadd.f32 %v588_v63, %v570_v3 }
 0x12a   : > { %v625_v6 = vmul.f32 %v617_v62, %v593_v0 }
 0x12b   : > { %v619_v9 = vpop.permute.xlu1 %618 }
 0x12c   : > { %v621_v12 = vsel %vm620_vm4, %v617_v62, %v619_v9  ;;  %631 = vrot.lane.b32.xlu1 %v625_v6, %s895_s15  ;;  %v627_v27 = vmul.f32 %v619_v9, %v595_v26 }
 0x12d   : > { %v626_v15 = vmul.f32 %v621_v12, %v594_v8 }
 0x12f   : > { %633 = vrot.lane.b32.xlu0 %v626_v15, %s895_s15  ;;  %v398_v30 = vpop.permute.xlu1 %397 }
 0x130   : > { %528 = vrot.lane.b32.xlu1 %v522_v18, %s894_s14 }
 0x133   : > { %v428_v33 = vpop.permute.xlu1 %427 }
 0x134   : > { %530 = vrot.lane.b32.xlu1 %v523_v23, %s894_s14 }
 0x136   : > { %v380_v31 = vpop.permute.xlu0 %379 }
 0x137   : > { %v400_v34 = vpop.permute.xlu1 %399  ;;  %v382_v11 = vmul.f32 %v380_v31, %v1048_v19  ;;  %v383_v39 = vmul.f32 %v380_v31, %v1043_v13 }
 0x138   : > { %635 = vrot.lane.b32.xlu1 %v627_v27, %s895_s15  ;;  %v404_v20 = vsel %vm403_vm6, %v398_v30, %v400_v34 }
 0x139   : > { %v408_v40 = vadd.f32 %v404_v20, %v382_v11 }
 0x13b   : > { %v647_v32 = vpop.permute.xlu0 %646  ;;  %v424_v36 = vpop.permute.xlu1 %423 }
 0x13f   : > { %v402_v35 = vpop.permute.xlu0 %401 }
 0x140   : > { %v405_v29 = vsel %vm403_vm6, %v400_v34, %v402_v35 }
 0x141   : > { %v409_v42 = vadd.f32 %v405_v29, %v383_v39 }
 0x143   : > { %v426_v25 = vpop.permute.xlu0 %425 }
 0x144   : > { %v430_v38 = vsel %vm429_vm3, %v424_v36, %v426_v25  ;;  %v431_v41 = vsel %vm429_vm3, %v426_v25, %v428_v33 }
 0x145   : > { %v434_v43 = vadd.f32 %v430_v38, %v408_v40  ;;  %v435_v47 = vadd.f32 %v431_v41, %v409_v42 }
 0x191   : > { %v533_v28 = vpop.permute.xlu0 %532 }
 0x19e   : > { %v632_v37 = vpop.permute.xlu1 %631 }
 0x1a1   : > { %v634_v44 = vpop.permute.xlu0 %633 }
 0x1a2   : > { %v529_v2 = vpop.permute.xlu1 %528  ;;  %v638_v49 = vsel %vm637_vm8, %v632_v37, %v634_v44 }
 0x1a6   : > { %v531_v45 = vpop.permute.xlu1 %530 }
 0x1a7   : > { %v535_v19 = vsel %vm534_vm7, %v529_v2, %v531_v45  ;;  %v536_v46 = vsel %vm534_vm7, %v531_v45, %v533_v28 }
 0x1a8   : > { %v539_v48 = vadd.f32 %v535_v19, %v434_v43  ;;  %v540_v50 = vadd.f32 %v536_v46, %v435_v47 }
 0x1aa   : > { %v642_v13 = vadd.f32 %v638_v49, %v539_v48  ;;  %v636_v51 = vpop.permute.xlu1 %635 }
 0x1ab   : > { %v639_v52 = vsel %vm637_vm8, %v634_v44, %v636_v51 }
 0x1ac   : > { %v649_v53 = vadd.f32 %v647_v32, %v642_v13  ;;  %v643_v54 = vadd.f32 %v639_v52, %v540_v50 }
 0x1ae   : > { %v650_v55 = vadd.f32 %v647_v32, %v643_v54  ;;  %vm651_vm9 = vcmp.ge.f32.partialorder %v649_v53, 0.0  ;;  %v653_v56 = vmul.f32 0.01, %v649_v53 }
 0x1b0   : > { %v654_v57 = vmul.f32 0.01, %v650_v55  ;;  %vm652_vm10 = vcmp.ge.f32.partialorder %v650_v55, 0.0  ;;  %v655_v58 = vsel %vm651_vm9, %v649_v53, %v653_v56 }
 0x1b1   : > { %657 = vst [vmem:[%s244_s19] sm:$0xff] %v655_v58 }
 0x1b2   : > { %v656_v59 = vsel %vm652_vm10, %v650_v55, %v654_v57 }
 0x1b3   : > { %658 = vst [vmem:[%s244_s19 + $0x8] sm:$0xff] %v656_v59 }
 0x1b4   : > { %829 = shalt.err (!%p826_p3)
}
 0x1b5   : > { %s830_s13 = scalar_lea.hbm %s1112_s29, 256  ;;  %s834_s16 = scalar_lea.hbm %s1162_s6, 512 }
 0x1b6   : > { %p831_p4 = scmp.ne.s32.totalorder %s1112_s29, %s830_s13  ;;  %p835_p9 = scmp.lt.u32.totalorder %s1112_s29, %s1162_s6 }
 0x1b7   : > { %p836_p10 = scmp.lt.u32.totalorder %s834_s16, %s830_s13  ;;  %p838_p12 = scmp.lt.u32.totalorder %s830_s13, %s1112_s29 }
 0x1b8   : > { %p832_p7 = pnand %p831_p4, %p970_p5 }
 0x1b9   : > { %p837_p11 = por %p836_p10, %p835_p9 }
 0x1ba   : > { %p833_p8 = pneg %p832_p7 }
 0x1bb   : > { %p839_p13 = por %p838_p12, %p837_p11 }
 0x1bd   : > { %p840_p0 = pnand %p839_p13, %p833_p8 }
 0x1bf   : > { %843 = shalt.err (!%p840_p0)
}
 0x1c0   : > { %747 = dma.vmem_to_hbm [thread:$0]  (%p970_p5), %s1114_s20, 256, %s1112_s29, %s660_s25  }
 0x1c1 PF: > { %p753_p1 = scmp.ge.s32.totalorder %s878_s24, 2  ;;  %s686_s19 = sand.u32 1, %s866_s21  }
 0x1c2   : > { %s687_s26 = scalar_lea.sflag [#allocation4], %s686_s19 }
 0x1c3   : > { %p750_p2 = pnand %p753_p1, %p974_p6 }
 0x1c5   : > { %861 = dma.done.wait (!%p750_p2), %s687_s26, 256  }
 0x1c6   : > { %863 = vsyncadd (!%p750_p2), %s687_s26, 4294967040  ;;  %p16_p3 = scmp.ge.s32.totalorder %s957_s27, 4   ;;  %s1165_s21 = smov %s870_s22 }
 0x1c7   : > { %s1166_s22 = smov %s874_s23  ;;  %s1167_s23 = smov %s968_s30 }
 0x1c8   : > { %s1168_s24 = smov %s957_s27  ;;  %18 = sbr.rel (!%p16_p3) target bundleno = 3 (0x3), region = 79 }
 0x1cf   :  { %692 = vsyncpa [#allocation4], 1 }
 0x1d0   :  { %694 = vsyncpa [#allocation4 + $0x1], 1 }

</bundles_post_ra>
